<compile_context>
chip_gen: v5e
topology: v5e:2x2
jax: 0.10.0
libtpu: 0.0.40
codegen_flags: <defaults>
</compile_context>

<pallas_src>
import functools
import math

import jax
import jax.numpy as jnp
from jax import lax
from jax.experimental import pallas as pl
from jax.experimental.pallas import tpu as pltpu


def _round_up(x, m):
    return (x + m - 1) // m * m


def _hw_budget():
    """(vmem_limit_bytes, token_tile_cap) per TPU generation; conservative fallback."""
    try:
        info = pltpu.get_tpu_info()
        vmem = int(getattr(info, "vmem_capacity_bytes", 64 * 1024 * 1024))
    except Exception:  # noqa: BLE001 - any failure -> safe-everywhere defaults
        vmem = 64 * 1024 * 1024
    if vmem >= 100 * 1024 * 1024:          # v5e / v6e: 128 MiB physical VMEM
        return 100 * 1024 * 1024, 1024
    return 56 * 1024 * 1024, 512           # v7x: 64 MiB physical VMEM


def _pick_token_tile(T, cap):
    """Single full tile (multiple of 8) if it fits, else the 128-multiple cap."""
    if T <= cap:
        return _round_up(max(T, 8), 8)
    return cap                              # cap is a multiple of 128


def _pick_ff_tile(FF, cap=2048):
    if FF <= cap:
        return FF
    for t in range(cap, 0, -128):
        if FF % t == 0:
            return t
    return FF                               # full dim is always a legal block


# ----------------------------------------------------------------------------
# Kernel 1 (fused): LN(norm1) -> MHA -> +residual -> LN(norm2) -> router softmax
#                   grid over B ("parallel")
# Outputs: y     = attention residual stream            [B, S, H]  (f32)
#          xn2   = norm2(y) in the matmul compute dtype [B, S, H]
#          probs = router softmax, lane-dense padded    [B, S, EP] (EP >= 128, f32)
# ----------------------------------------------------------------------------
def _attn_norm_router_kernel(x_ref, g1_ref, b1_ref, wqkv_ref, bqkv_ref,
                             wo_ref, bo_ref, g2_ref, b2_ref, wr_ref,
                             y_ref, xn2_ref, probs_ref, ctx_ref,
                             *, num_heads, num_experts, eps):
    cdt = wqkv_ref.dtype                           # matmul compute dtype (bf16 or f32)
    x = x_ref[0]                                   # [S, H] f32 (raw input = residual)
    S, H = x.shape
    hd = H // num_heads

    # LayerNorm (norm1), biased variance, eps inside rsqrt — f32.
    mu = jnp.mean(x, axis=-1, keepdims=True)
    var = jnp.mean((x - mu) ** 2, axis=-1, keepdims=True)
    xn1 = (x - mu) * lax.rsqrt(var + eps) * g1_ref[...] + b1_ref[...]

    # Fused QKV projection: one [S,H]x[H,3H] matmul (weights pre-transposed/cast on host).
    # TODO(synk): N-tile the 3H output dim for very large H (bf16 already halves the block).
    qkv = jnp.dot(xn1.astype(cdt), wqkv_ref[...],
                  preferred_element_type=jnp.float32) + bqkv_ref[...]

    scale = 1.0 / math.sqrt(hd)
    # Per-head attention; contexts go into a (S, H) VMEM scratch so the output
    # projection is ONE K=H matmul after the loop (no per-head accumulator RMW).
    # TODO(synk): flash-style KV/q tiling with online softmax for long sequences.
    for h in range(num_heads):
        qh = qkv[:, h * hd:(h + 1) * hd].astype(cdt)
        kh = qkv[:, H + h * hd:H + (h + 1) * hd].astype(cdt)
        vh = qkv[:, 2 * H + h * hd:2 * H + (h + 1) * hd].astype(cdt)
        s = lax.dot_general(qh, kh, (((1,), (1,)), ((), ())),
                            preferred_element_type=jnp.float32) * scale      # [S, S]
        s = s - jnp.max(s, axis=-1, keepdims=True)
        p = jnp.exp(s)
        p = p * pl.reciprocal(jnp.sum(p, axis=-1, keepdims=True), approx=True)
        ctx_ref[:, h * hd:(h + 1) * hd] = jnp.dot(
            p.astype(cdt), vh, preferred_element_type=jnp.float32).astype(cdt)

    attn = jnp.dot(ctx_ref[...], wo_ref[...], preferred_element_type=jnp.float32)
    y = attn + bo_ref[...] + x                     # dropout is identity at inference
    y_ref[0] = y.astype(y_ref.dtype)

    # LayerNorm (norm2) fused into the epilogue — y is still in vregs.
    mu2 = jnp.mean(y, axis=-1, keepdims=True)
    var2 = jnp.mean((y - mu2) ** 2, axis=-1, keepdims=True)
    xn2 = (y - mu2) * lax.rsqrt(var2 + eps) * g2_ref[...] + b2_ref[...]
    xn2_ref[0] = xn2.astype(xn2_ref.dtype)

    # Router matmul against a lane-dense [H, EP] weight (zero-padded columns),
    # masked softmax over the real num_experts columns only.  Exact division here:
    # these probs feed top_k / gate normalization (correctness over approx recip).
    logits = jnp.dot(xn2.astype(cdt), wr_ref[...], preferred_element_type=jnp.float32)
    col = lax.broadcasted_iota(jnp.int32, logits.shape, 1)
    logits = jnp.where(col < num_experts, logits, -1e30)
    m = jnp.max(logits, axis=-1, keepdims=True)
    ez = jnp.exp(logits - m)
    probs_ref[0] = ez / jnp.sum(ez, axis=-1, keepdims=True)


def attn_norm_router(x, g1, b1, wqkv_t, bqkv, wo_t, bo, g2, b2, wr_t,
                     *, num_heads, num_experts, eps, act_dtype, vmem_limit):
    B, S, H = x.shape
    EP = wr_t.shape[1]
    hd = H // num_heads
    kernel = functools.partial(_attn_norm_router_kernel, num_heads=num_heads,
                               num_experts=num_experts, eps=eps)
    witem = wqkv_t.dtype.itemsize
    cost = pl.CostEstimate(
        flops=int(B * (2 * S * H * 3 * H + num_heads * 4 * S * S * hd
                       + 2 * S * H * H + 2 * S * H * EP)),
        transcendentals=int(B * S * (num_heads * S + EP + 4)),
        bytes_accessed=int(B * S * H * 4
                           + (3 * H * H + H * H + H * EP) * witem
                           + B * S * H * (4 + jnp.dtype(act_dtype).itemsize)
                           + B * S * EP * 4))
    # NOTE: the weight/bias BlockSpecs below have constant index maps, so they are
    # DMA'd only once across the grid (the second pipeline buffer is the only waste).
    return pl.pallas_call(
        kernel,
        out_shape=(jax.ShapeDtypeStruct((B, S, H), x.dtype),
                   jax.ShapeDtypeStruct((B, S, H), act_dtype),
                   jax.ShapeDtypeStruct((B, S, EP), jnp.float32)),
        grid=(B,),
        in_specs=[
            pl.BlockSpec((1, S, H), lambda b: (b, 0, 0)),
            pl.BlockSpec((1, H), lambda b: (0, 0)),
            pl.BlockSpec((1, H), lambda b: (0, 0)),
            pl.BlockSpec((H, 3 * H), lambda b: (0, 0)),
            pl.BlockSpec((1, 3 * H), lambda b: (0, 0)),
            pl.BlockSpec((H, H), lambda b: (0, 0)),
            pl.BlockSpec((1, H), lambda b: (0, 0)),
            pl.BlockSpec((1, H), lambda b: (0, 0)),
            pl.BlockSpec((1, H), lambda b: (0, 0)),
            pl.BlockSpec((H, EP), lambda b: (0, 0)),
        ],
        out_specs=(pl.BlockSpec((1, S, H), lambda b: (b, 0, 0)),
                   pl.BlockSpec((1, S, H), lambda b: (b, 0, 0)),
                   pl.BlockSpec((1, S, EP), lambda b: (b, 0, 0))),
        scratch_shapes=[pltpu.VMEM((S, H), wqkv_t.dtype)],
        compiler_params=pltpu.CompilerParams(
            dimension_semantics=("parallel",),
            vmem_limit_bytes=vmem_limit),
        cost_estimate=cost,
    )(x, g1, b1, wqkv_t, bqkv, wo_t, bo, g2, b2, wr_t)


# ----------------------------------------------------------------------------
# Kernel 2: experts (Linear -> GELU -> Linear), gated combine + residual.
#   grid = (token tiles ["parallel"], experts, FF tiles) with expert weights
#   FF-tiled; (tm, H) f32 accumulator scratch.  Scalar-prefetched per-(tile, expert)
#   routed-token counts skip the compute of empty experts, and per-grid-step
#   (expert, ff) block-index tables make the weight index_map repeat the previous
#   block for empty experts so the weight DMA is skipped too.
# ----------------------------------------------------------------------------
def _moe_expert_kernel(cnt_ref, eblk_ref, fblk_ref,
                       xn_ref, gate_ref, res_ref,
                       w1_ref, b1_ref, w2_ref, b2_ref,
                       o_ref, acc_ref, *, gelu_approximate):
    t = pl.program_id(0)
    e = pl.program_id(1)
    f = pl.program_id(2)

    @pl.when(jnp.logical_and(e == 0, f == 0))
    def _():
        acc_ref[...] = res_ref[...].astype(jnp.float32)   # start from the residual

    @pl.when(cnt_ref[t, e] > 0)                           # skip compute if expert empty
    def _():
        cdt = w1_ref.dtype
        xn = xn_ref[...].astype(cdt)                       # [tm, H]
        h = jnp.dot(xn, w1_ref[0], preferred_element_type=jnp.float32) + b1_ref[0]
        h = jax.nn.gelu(h, approximate=gelu_approximate)   # exact erf by default
        oe = jnp.dot(h.astype(cdt), w2_ref[0],
                     preferred_element_type=jnp.float32)   # [tm, H] partial over FF
        g = jnp.transpose(gate_ref[...])                   # (1, tm) -> (tm, 1) combine w.
        bias2 = jnp.where(f == 0, 1.0, 0.0).astype(jnp.float32)  # add b2 once per expert
        acc_ref[...] += g * (oe + bias2 * b2_ref[0])

    @pl.when(jnp.logical_and(e == pl.num_programs(1) - 1,
                             f == pl.num_programs(2) - 1))
    def _():
        o_ref[...] = acc_ref[...].astype(o_ref.dtype)


def moe_combine(tile_counts, eblk, fblk, xn, gates_et, res, w1_t, b1e, w2_t, b2e,
                *, tm, ff_t, vmem_limit, gelu_approximate):
    T2, H = res.shape
    E, _, FF = w1_t.shape
    n_tiles = T2 // tm
    n_ff = FF // ff_t

    def w1_map(t, e, f, cnt, eb, fb):
        step = (t * E + e) * n_ff + f
        return (eb[step], 0, fb[step])

    def w2_map(t, e, f, cnt, eb, fb):
        step = (t * E + e) * n_ff + f
        return (eb[step], fb[step], 0)

    grid_spec = pltpu.PrefetchScalarGridSpec(
        num_scalar_prefetch=3,
        grid=(n_tiles, E, n_ff),
        in_specs=[
            pl.BlockSpec((tm, H), lambda t, e, f, cnt, eb, fb: (t, 0)),       # xn2
            pl.BlockSpec((1, tm), lambda t, e, f, cnt, eb, fb: (e, t)),       # gates (lane-dense)
            pl.BlockSpec((tm, H), lambda t, e, f, cnt, eb, fb: (t, 0)),       # residual
            pl.BlockSpec((1, H, ff_t), w1_map),                               # w1 chunk
            pl.BlockSpec((1, 1, ff_t), lambda t, e, f, cnt, eb, fb: (e, 0, f)),
            pl.BlockSpec((1, ff_t, H), w2_map),                               # w2 chunk
            pl.BlockSpec((1, 1, H), lambda t, e, f, cnt, eb, fb: (e, 0, 0)),
        ],
        out_specs=pl.BlockSpec((tm, H), lambda t, e, f, cnt, eb, fb: (t, 0)),
        scratch_shapes=[pltpu.VMEM((tm, H), jnp.float32)],
    )
    witem = w1_t.dtype.itemsize
    cost = pl.CostEstimate(
        flops=int(4 * T2 * E * H * FF + 2 * T2 * E * H),
        transcendentals=int(T2 * E * FF),
        bytes_accessed=int(n_tiles * E * 2 * H * FF * witem
                           + T2 * H * (8 + xn.dtype.itemsize) + E * T2 * 4))
    kernel = functools.partial(_moe_expert_kernel, gelu_approximate=gelu_approximate)
    return pl.pallas_call(
        kernel,
        out_shape=jax.ShapeDtypeStruct((T2, H), res.dtype),
        grid_spec=grid_spec,
        compiler_params=pltpu.CompilerParams(
            dimension_semantics=("parallel", "arbitrary", "arbitrary"),
            vmem_limit_bytes=vmem_limit),
        cost_estimate=cost,
    )(tile_counts, eblk, fblk, xn, gates_et, res, w1_t, b1e, w2_t, b2e)


# ----------------------------------------------------------------------------
# Full forward pass
# ----------------------------------------------------------------------------
def moe_transformer_block(x, params, *, num_heads, num_experts, top_k,
                          capacity_factor=1.5, eps=1e-5,
                          use_bf16_matmul=True, gelu_approximate=False):
    B, S, H = x.shape
    T = B * S
    E = num_experts
    vmem_limit, tok_cap = _hw_budget()

    # One-time host-side weight relayout + cast: removes every in-kernel weight
    # transpose; bf16 halves weight DMA/VMEM and uses the bf16-native MXU.
    wdt = jnp.bfloat16 if use_bf16_matmul else jnp.float32
    wqkv_t = params["wqkv"].T.astype(wdt)                            # [H, 3H]
    wo_t = params["wo"].T.astype(wdt)                                # [H, H]
    EP = max(128, _round_up(E, 128))
    wr_t = jnp.zeros((H, EP), wdt).at[:, :E].set(params["wr"].T.astype(wdt))
    w1_t = jnp.transpose(params["w1"], (0, 2, 1)).astype(wdt)        # [E, H, FF]
    w2_t = jnp.transpose(params["w2"], (0, 2, 1)).astype(wdt)        # [E, FF, H]
    FF = w1_t.shape[2]

    # norm1 + attention + residual + norm2 + router softmax (one fused Pallas kernel)
    y, xn2, probs_pad = attn_norm_router(
        x, params["g1"], params["b1"], wqkv_t, params["bqkv"], wo_t, params["bo"],
        params["g2"], params["b2"], wr_t,
        num_heads=num_heads, num_experts=E, eps=eps,
        act_dtype=wdt, vmem_limit=vmem_limit)

    y2d = y.reshape(T, H)
    xn2d = xn2.reshape(T, H)
    probs = probs_pad.reshape(T, EP)[:, :E].astype(jnp.float32)

    # --- routing glue (plain JAX): top-k + normalization + capacity-limited dispatch.
    # Greedy per-token loop of MoERouter (order b, s, k) == keep the first `capacity`
    # arrivals per expert in flattened order.  top-k probs renormalized BEFORE the
    # capacity mask; capacity = int((T/E)*cf) truncated, as in the torch reference.
    capacity = int((T / E) * capacity_factor)
    topv, topi = jax.lax.top_k(probs, top_k)                          # [T, k]
    topv = topv / jnp.sum(topv, axis=-1, keepdims=True)
    flat_idx = topi.reshape(-1)                                       # torch loop order
    onehot = jax.nn.one_hot(flat_idx, E, dtype=jnp.int32)
    arrival_pos = jnp.sum(jnp.cumsum(onehot, axis=0) * onehot, axis=-1)   # 1-based
    keep = (arrival_pos <= capacity).reshape(T, top_k).astype(jnp.float32)
    gate_vals = topv * keep                                           # [T, k]
    gates = jnp.zeros((T, E), jnp.float32).at[
        jnp.arange(T)[:, None], topi].add(gate_vals)                  # [T, E]
    # TODO(synk): replace the O(T*k*E) one_hot+cumsum with a sort/segment formulation
    # (or a small SMEM Pallas pass) for very large T*E.

    # --- tiling + padding (T padded to a multiple of the token tile) ---------------
    tm = _pick_token_tile(T, tok_cap)
    T2 = _round_up(T, tm)
    n_tiles = T2 // tm
    ff_t = _pick_ff_tile(FF)
    n_ff = FF // ff_t
    pad = T2 - T
    xn2p = jnp.pad(xn2d, ((0, pad), (0, 0)))
    y2dp = jnp.pad(y2d, ((0, pad), (0, 0)))
    gatesp = jnp.pad(gates, ((0, pad), (0, 0)))
    gates_et = jnp.transpose(gatesp)                                  # [E, T2] lane-dense

    # Per-(token tile, expert) routed-token counts -> compute skip for empty experts.
    tile_counts = (gatesp > 0).reshape(n_tiles, tm, E).astype(jnp.int32).sum(axis=1)

    # Per-grid-step effective (expert, ff) block indices: empty experts repeat the
    # previously fetched block, so the pipelined weight DMA is skipped entirely.
    n_steps = n_tiles * E * n_ff
    e_seq = jnp.tile(jnp.repeat(jnp.arange(E, dtype=jnp.int32), n_ff), n_tiles)
    f_seq = jnp.tile(jnp.arange(n_ff, dtype=jnp.int32), n_tiles * E)
    nonempty_step = jnp.repeat((tile_counts > 0).reshape(-1), n_ff)
    pos = jnp.where(nonempty_step, jnp.arange(n_steps, dtype=jnp.int32), -1)
    last = jnp.maximum(jax.lax.cummax(pos), 0)
    eblk = e_seq[last]
    fblk = f_seq[last]

    # experts + gated combine + residual (Pallas)
    out2d = moe_combine(tile_counts, eblk, fblk, xn2p, gates_et, y2dp,
                        w1_t, params["b1e"], w2_t, params["b2e"],
                        tm=tm, ff_t=ff_t, vmem_limit=vmem_limit,
                        gelu_approximate=gelu_approximate)
    # TODO(synk): expert_metrics / aux_loss dict (python-side bookkeeping in the torch
    # reference) is not returned; only the output tensor is produced.
    return out2d[:T].reshape(B, S, H)


# ----------------------------------------------------------------------------
if __name__ == "__main__":
    B, S, H = 2, 8, 32
    NUM_HEADS, FF, E, K = 4, 64, 4, 2

    key = jax.random.PRNGKey(0)
    ks = jax.random.split(key, 10)
    nrm = lambda k, shape, s: s * jax.random.normal(k, shape, jnp.float32)

    params = {
        # LayerNorms: PyTorch default init (weight=1, bias=0)
        "g1": jnp.ones((1, H), jnp.float32), "b1": jnp.zeros((1, H), jnp.float32),
        "g2": jnp.ones((1, H), jnp.float32), "b2": jnp.zeros((1, H), jnp.float32),
        # MultiheadAttention (PyTorch layout [out, in]; transposed/cast on the host)
        "wqkv": nrm(ks[0], (3 * H, H), 0.05), "bqkv": nrm(ks[1], (1, 3 * H), 0.05),
        "wo": nrm(ks[2], (H, H), 0.05), "bo": jnp.zeros((1, H), jnp.float32),
        # Router (std=0.01 as in MoERouter.__init__)
        "wr": nrm(ks[3], (E, H), 0.01),
        # Stacked expert weights [E, out, in]; biases as [E, 1, out]
        "w1": nrm(ks[4], (E, FF, H), 0.05), "b1e": nrm(ks[5], (E, 1, FF), 0.05),
        "w2": nrm(ks[6], (E, H, FF), 0.05), "b2e": nrm(ks[7], (E, 1, H), 0.05),
    }

    x = jax.random.normal(ks[8], (B, S, H), jnp.float32)

    out = moe_transformer_block(x, params, num_heads=NUM_HEADS, num_experts=E,
                                top_k=K, capacity_factor=1.5, eps=1e-5)
    out = jax.block_until_ready(out)
    assert out.shape == (B, S, H) and bool(jnp.all(jnp.isfinite(out)))
    print("KERNEL_OK")
</pallas_src>

<mosaic_0001>
module attributes {stable_mosaic.version = 11 : i64} {
  func.func @_attn_norm_router_kernel(%arg0: i32, %arg1: memref<1x8x32xf32, #tpu.memory_space<vmem>>, %arg2: memref<1x32xf32, #tpu.memory_space<vmem>>, %arg3: memref<1x32xf32, #tpu.memory_space<vmem>>, %arg4: memref<32x96xbf16, #tpu.memory_space<vmem>>, %arg5: memref<1x96xf32, #tpu.memory_space<vmem>>, %arg6: memref<32x32xbf16, #tpu.memory_space<vmem>>, %arg7: memref<1x32xf32, #tpu.memory_space<vmem>>, %arg8: memref<1x32xf32, #tpu.memory_space<vmem>>, %arg9: memref<1x32xf32, #tpu.memory_space<vmem>>, %arg10: memref<32x128xbf16, #tpu.memory_space<vmem>>, %arg11: memref<1x8x32xf32, #tpu.memory_space<vmem>>, %arg12: memref<1x8x32xbf16, #tpu.memory_space<vmem>>, %arg13: memref<1x8x128xf32, #tpu.memory_space<vmem>>, %arg14: memref<8x32xbf16, #tpu.memory_space<vmem>>) attributes {dimension_semantics = [#tpu.dimension_semantics<parallel>], iteration_bounds = array<i64: 2>, scalar_prefetch = 0 : i64, scratch_operands = 1 : i64, tpu.core_type = #tpu.core_type<tc>, window_params = [{transform_indices = @transform_0, window_bounds = array<i64: 1, 8, 32>}, {pipeline_mode = #tpu.pipeline_mode<synchronous>, transform_indices = @transform_1, window_bounds = array<i64: 1, 32>}, {pipeline_mode = #tpu.pipeline_mode<synchronous>, transform_indices = @transform_2, window_bounds = array<i64: 1, 32>}, {pipeline_mode = #tpu.pipeline_mode<synchronous>, transform_indices = @transform_3, window_bounds = array<i64: 32, 96>}, {pipeline_mode = #tpu.pipeline_mode<synchronous>, transform_indices = @transform_4, window_bounds = array<i64: 1, 96>}, {pipeline_mode = #tpu.pipeline_mode<synchronous>, transform_indices = @transform_5, window_bounds = array<i64: 32, 32>}, {pipeline_mode = #tpu.pipeline_mode<synchronous>, transform_indices = @transform_6, window_bounds = array<i64: 1, 32>}, {pipeline_mode = #tpu.pipeline_mode<synchronous>, transform_indices = @transform_7, window_bounds = array<i64: 1, 32>}, {pipeline_mode = #tpu.pipeline_mode<synchronous>, transform_indices = @transform_8, window_bounds = array<i64: 1, 32>}, {pipeline_mode = #tpu.pipeline_mode<synchronous>, transform_indices = @transform_9, window_bounds = array<i64: 32, 128>}, {transform_indices = @transform_10, window_bounds = array<i64: 1, 8, 32>}, {transform_indices = @transform_11, window_bounds = array<i64: 1, 8, 32>}, {transform_indices = @transform_12, window_bounds = array<i64: 1, 8, 128>}]} {
    %c0 = arith.constant 0 : index
    %c0_0 = arith.constant 0 : index
    %c0_1 = arith.constant 0 : index
    %0 = vector.load %arg1[%c0, %c0_0, %c0_1] : memref<1x8x32xf32, #tpu.memory_space<vmem>>, vector<1x8x32xf32>
    %1 = vector.shape_cast %0 : vector<1x8x32xf32> to vector<8x32xf32>
    %cst = arith.constant dense<0.000000e+00> : vector<8xf32>
    %2 = vector.multi_reduction <add>, %1, %cst [1] : vector<8x32xf32> to vector<8xf32>
    %3 = vector.shape_cast %2 : vector<8xf32> to vector<8x1xf32>
    %cst_2 = arith.constant 3.200000e+01 : f32
    %4 = vector.broadcast %cst_2 : f32 to vector<8x1xf32>
    %5 = arith.divf %3, %4 : vector<8x1xf32>
    %6 = vector.broadcast %5 : vector<8x1xf32> to vector<8x32xf32>
    %7 = arith.subf %1, %6 : vector<8x32xf32>
    %8 = arith.mulf %7, %7 : vector<8x32xf32>
    %cst_3 = arith.constant dense<0.000000e+00> : vector<8xf32>
    %9 = vector.multi_reduction <add>, %8, %cst_3 [1] : vector<8x32xf32> to vector<8xf32>
    %10 = vector.shape_cast %9 : vector<8xf32> to vector<8x1xf32>
    %cst_4 = arith.constant 3.200000e+01 : f32
    %11 = vector.broadcast %cst_4 : f32 to vector<8x1xf32>
    %12 = arith.divf %10, %11 : vector<8x1xf32>
    %13 = vector.broadcast %5 : vector<8x1xf32> to vector<8x32xf32>
    %14 = arith.subf %1, %13 : vector<8x32xf32>
    %cst_5 = arith.constant 9.99999974E-6 : f32
    %15 = vector.broadcast %cst_5 : f32 to vector<8x1xf32>
    %16 = arith.addf %12, %15 : vector<8x1xf32>
    %17 = math.rsqrt %16 : vector<8x1xf32>
    %18 = vector.broadcast %17 : vector<8x1xf32> to vector<8x32xf32>
    %19 = arith.mulf %14, %18 : vector<8x32xf32>
    %c0_6 = arith.constant 0 : index
    %c0_7 = arith.constant 0 : index
    %20 = vector.load %arg2[%c0_6, %c0_7] : memref<1x32xf32, #tpu.memory_space<vmem>>, vector<1x32xf32>
    %21 = vector.broadcast %20 : vector<1x32xf32> to vector<8x32xf32>
    %22 = arith.mulf %19, %21 : vector<8x32xf32>
    %c0_8 = arith.constant 0 : index
    %c0_9 = arith.constant 0 : index
    %23 = vector.load %arg3[%c0_8, %c0_9] : memref<1x32xf32, #tpu.memory_space<vmem>>, vector<1x32xf32>
    %24 = vector.broadcast %23 : vector<1x32xf32> to vector<8x32xf32>
    %25 = arith.addf %22, %24 : vector<8x32xf32>
    %26 = arith.truncf %25 : vector<8x32xf32> to vector<8x32xbf16>
    %c0_10 = arith.constant 0 : index
    %c0_11 = arith.constant 0 : index
    %27 = vector.load %arg4[%c0_10, %c0_11] : memref<32x96xbf16, #tpu.memory_space<vmem>>, vector<32x96xbf16>
    %cst_12 = arith.constant dense<0.000000e+00> : vector<8x96xf32>
    %28 = tpu.matmul %26, %27, %cst_12 {dimension_numbers = #tpu.dot_dimension_numbers<[1], [0], [0], [1], [0, 0, 1, 1], [], []>} : vector<8x32xbf16>, vector<32x96xbf16>, vector<8x96xf32> -> vector<8x96xf32>
    %c0_13 = arith.constant 0 : index
    %c0_14 = arith.constant 0 : index
    %29 = vector.load %arg5[%c0_13, %c0_14] : memref<1x96xf32, #tpu.memory_space<vmem>>, vector<1x96xf32>
    %30 = vector.broadcast %29 : vector<1x96xf32> to vector<8x96xf32>
    %31 = arith.addf %28, %30 : vector<8x96xf32>
    %32 = vector.extract_strided_slice %31 {offsets = [0, 0], sizes = [8, 8], strides = [1, 1]} : vector<8x96xf32> to vector<8x8xf32>
    %33 = arith.truncf %32 : vector<8x8xf32> to vector<8x8xbf16>
    %34 = vector.extract_strided_slice %31 {offsets = [0, 32], sizes = [8, 8], strides = [1, 1]} : vector<8x96xf32> to vector<8x8xf32>
    %35 = arith.truncf %34 : vector<8x8xf32> to vector<8x8xbf16>
    %36 = vector.extract_strided_slice %31 {offsets = [0, 64], sizes = [8, 8], strides = [1, 1]} : vector<8x96xf32> to vector<8x8xf32>
    %37 = arith.truncf %36 : vector<8x8xf32> to vector<8x8xbf16>
    %cst_15 = arith.constant dense<0.000000e+00> : vector<8x8xf32>
    %38 = tpu.matmul %33, %35, %cst_15 {dimension_numbers = #tpu.dot_dimension_numbers<[1], [1], [0], [0], [0, 0, 1, 0], [], []>} : vector<8x8xbf16>, vector<8x8xbf16>, vector<8x8xf32> -> vector<8x8xf32>
    %cst_16 = arith.constant 0.353553385 : f32
    %39 = vector.broadcast %cst_16 : f32 to vector<8x8xf32>
    %40 = arith.mulf %38, %39 : vector<8x8xf32>
    %cst_17 = arith.constant dense<0xFF800000> : vector<8xf32>
    %41 = vector.multi_reduction <maximumf>, %40, %cst_17 [1] : vector<8x8xf32> to vector<8xf32>
    %42 = vector.shape_cast %41 : vector<8xf32> to vector<8x1xf32>
    %43 = vector.broadcast %42 : vector<8x1xf32> to vector<8x8xf32>
    %44 = arith.subf %40, %43 : vector<8x8xf32>
    %45 = math.exp %44 : vector<8x8xf32>
    %cst_18 = arith.constant dense<0.000000e+00> : vector<8xf32>
    %46 = vector.multi_reduction <add>, %45, %cst_18 [1] : vector<8x8xf32> to vector<8xf32>
    %47 = vector.shape_cast %46 : vector<8xf32> to vector<8x1xf32>
    %48 = tpu.reciprocal %47 {approx = true} : vector<8x1xf32> -> vector<8x1xf32>
    %49 = vector.broadcast %48 : vector<8x1xf32> to vector<8x8xf32>
    %50 = arith.mulf %45, %49 : vector<8x8xf32>
    %51 = arith.truncf %50 : vector<8x8xf32> to vector<8x8xbf16>
    %cst_19 = arith.constant dense<0.000000e+00> : vector<8x8xf32>
    %52 = tpu.matmul %51, %37, %cst_19 {dimension_numbers = #tpu.dot_dimension_numbers<[1], [0], [0], [1], [0, 0, 1, 1], [], []>} : vector<8x8xbf16>, vector<8x8xbf16>, vector<8x8xf32> -> vector<8x8xf32>
    %53 = arith.truncf %52 : vector<8x8xf32> to vector<8x8xbf16>
    %c0_20 = arith.constant 0 : index
    %c0_21 = arith.constant 0 : index
    %54 = vector.load %arg14[%c0_20, %c0_21] : memref<8x32xbf16, #tpu.memory_space<vmem>>, vector<8x8xbf16>
    tpu.vector_store %arg14[%c0_20, %c0_21], %53 {strides = array<i32>} : memref<8x32xbf16, #tpu.memory_space<vmem>>, vector<8x8xbf16>,
    %55 = vector.extract_strided_slice %31 {offsets = [0, 8], sizes = [8, 8], strides = [1, 1]} : vector<8x96xf32> to vector<8x8xf32>
    %56 = arith.truncf %55 : vector<8x8xf32> to vector<8x8xbf16>
    %57 = vector.extract_strided_slice %31 {offsets = [0, 40], sizes = [8, 8], strides = [1, 1]} : vector<8x96xf32> to vector<8x8xf32>
    %58 = arith.truncf %57 : vector<8x8xf32> to vector<8x8xbf16>
    %59 = vector.extract_strided_slice %31 {offsets = [0, 72], sizes = [8, 8], strides = [1, 1]} : vector<8x96xf32> to vector<8x8xf32>
    %60 = arith.truncf %59 : vector<8x8xf32> to vector<8x8xbf16>
    %cst_22 = arith.constant dense<0.000000e+00> : vector<8x8xf32>
    %61 = tpu.matmul %56, %58, %cst_22 {dimension_numbers = #tpu.dot_dimension_numbers<[1], [1], [0], [0], [0, 0, 1, 0], [], []>} : vector<8x8xbf16>, vector<8x8xbf16>, vector<8x8xf32> -> vector<8x8xf32>
    %cst_23 = arith.constant 0.353553385 : f32
    %62 = vector.broadcast %cst_23 : f32 to vector<8x8xf32>
    %63 = arith.mulf %61, %62 : vector<8x8xf32>
    %cst_24 = arith.constant dense<0xFF800000> : vector<8xf32>
    %64 = vector.multi_reduction <maximumf>, %63, %cst_24 [1] : vector<8x8xf32> to vector<8xf32>
    %65 = vector.shape_cast %64 : vector<8xf32> to vector<8x1xf32>
    %66 = vector.broadcast %65 : vector<8x1xf32> to vector<8x8xf32>
    %67 = arith.subf %63, %66 : vector<8x8xf32>
    %68 = math.exp %67 : vector<8x8xf32>
    %cst_25 = arith.constant dense<0.000000e+00> : vector<8xf32>
    %69 = vector.multi_reduction <add>, %68, %cst_25 [1] : vector<8x8xf32> to vector<8xf32>
    %70 = vector.shape_cast %69 : vector<8xf32> to vector<8x1xf32>
    %71 = tpu.reciprocal %70 {approx = true} : vector<8x1xf32> -> vector<8x1xf32>
    %72 = vector.broadcast %71 : vector<8x1xf32> to vector<8x8xf32>
    %73 = arith.mulf %68, %72 : vector<8x8xf32>
    %74 = arith.truncf %73 : vector<8x8xf32> to vector<8x8xbf16>
    %cst_26 = arith.constant dense<0.000000e+00> : vector<8x8xf32>
    %75 = tpu.matmul %74, %60, %cst_26 {dimension_numbers = #tpu.dot_dimension_numbers<[1], [0], [0], [1], [0, 0, 1, 1], [], []>} : vector<8x8xbf16>, vector<8x8xbf16>, vector<8x8xf32> -> vector<8x8xf32>
    %76 = arith.truncf %75 : vector<8x8xf32> to vector<8x8xbf16>
    %c0_27 = arith.constant 0 : index
    %c8 = arith.constant 8 : index
    %77 = vector.load %arg14[%c0_27, %c8] : memref<8x32xbf16, #tpu.memory_space<vmem>>, vector<8x8xbf16>
    tpu.vector_store %arg14[%c0_27, %c8], %76 {strides = array<i32>} : memref<8x32xbf16, #tpu.memory_space<vmem>>, vector<8x8xbf16>,
    %78 = vector.extract_strided_slice %31 {offsets = [0, 16], sizes = [8, 8], strides = [1, 1]} : vector<8x96xf32> to vector<8x8xf32>
    %79 = arith.truncf %78 : vector<8x8xf32> to vector<8x8xbf16>
    %80 = vector.extract_strided_slice %31 {offsets = [0, 48], sizes = [8, 8], strides = [1, 1]} : vector<8x96xf32> to vector<8x8xf32>
    %81 = arith.truncf %80 : vector<8x8xf32> to vector<8x8xbf16>
    %82 = vector.extract_strided_slice %31 {offsets = [0, 80], sizes = [8, 8], strides = [1, 1]} : vector<8x96xf32> to vector<8x8xf32>
    %83 = arith.truncf %82 : vector<8x8xf32> to vector<8x8xbf16>
    %cst_28 = arith.constant dense<0.000000e+00> : vector<8x8xf32>
    %84 = tpu.matmul %79, %81, %cst_28 {dimension_numbers = #tpu.dot_dimension_numbers<[1], [1], [0], [0], [0, 0, 1, 0], [], []>} : vector<8x8xbf16>, vector<8x8xbf16>, vector<8x8xf32> -> vector<8x8xf32>
    %cst_29 = arith.constant 0.353553385 : f32
    %85 = vector.broadcast %cst_29 : f32 to vector<8x8xf32>
    %86 = arith.mulf %84, %85 : vector<8x8xf32>
    %cst_30 = arith.constant dense<0xFF800000> : vector<8xf32>
    %87 = vector.multi_reduction <maximumf>, %86, %cst_30 [1] : vector<8x8xf32> to vector<8xf32>
    %88 = vector.shape_cast %87 : vector<8xf32> to vector<8x1xf32>
    %89 = vector.broadcast %88 : vector<8x1xf32> to vector<8x8xf32>
    %90 = arith.subf %86, %89 : vector<8x8xf32>
    %91 = math.exp %90 : vector<8x8xf32>
    %cst_31 = arith.constant dense<0.000000e+00> : vector<8xf32>
    %92 = vector.multi_reduction <add>, %91, %cst_31 [1] : vector<8x8xf32> to vector<8xf32>
    %93 = vector.shape_cast %92 : vector<8xf32> to vector<8x1xf32>
    %94 = tpu.reciprocal %93 {approx = true} : vector<8x1xf32> -> vector<8x1xf32>
    %95 = vector.broadcast %94 : vector<8x1xf32> to vector<8x8xf32>
    %96 = arith.mulf %91, %95 : vector<8x8xf32>
    %97 = arith.truncf %96 : vector<8x8xf32> to vector<8x8xbf16>
    %cst_32 = arith.constant dense<0.000000e+00> : vector<8x8xf32>
    %98 = tpu.matmul %97, %83, %cst_32 {dimension_numbers = #tpu.dot_dimension_numbers<[1], [0], [0], [1], [0, 0, 1, 1], [], []>} : vector<8x8xbf16>, vector<8x8xbf16>, vector<8x8xf32> -> vector<8x8xf32>
    %99 = arith.truncf %98 : vector<8x8xf32> to vector<8x8xbf16>
    %c0_33 = arith.constant 0 : index
    %c16 = arith.constant 16 : index
    %100 = vector.load %arg14[%c0_33, %c16] : memref<8x32xbf16, #tpu.memory_space<vmem>>, vector<8x8xbf16>
    tpu.vector_store %arg14[%c0_33, %c16], %99 {strides = array<i32>} : memref<8x32xbf16, #tpu.memory_space<vmem>>, vector<8x8xbf16>,
    %101 = vector.extract_strided_slice %31 {offsets = [0, 24], sizes = [8, 8], strides = [1, 1]} : vector<8x96xf32> to vector<8x8xf32>
    %102 = arith.truncf %101 : vector<8x8xf32> to vector<8x8xbf16>
    %103 = vector.extract_strided_slice %31 {offsets = [0, 56], sizes = [8, 8], strides = [1, 1]} : vector<8x96xf32> to vector<8x8xf32>
    %104 = arith.truncf %103 : vector<8x8xf32> to vector<8x8xbf16>
    %105 = vector.extract_strided_slice %31 {offsets = [0, 88], sizes = [8, 8], strides = [1, 1]} : vector<8x96xf32> to vector<8x8xf32>
    %106 = arith.truncf %105 : vector<8x8xf32> to vector<8x8xbf16>
    %cst_34 = arith.constant dense<0.000000e+00> : vector<8x8xf32>
    %107 = tpu.matmul %102, %104, %cst_34 {dimension_numbers = #tpu.dot_dimension_numbers<[1], [1], [0], [0], [0, 0, 1, 0], [], []>} : vector<8x8xbf16>, vector<8x8xbf16>, vector<8x8xf32> -> vector<8x8xf32>
    %cst_35 = arith.constant 0.353553385 : f32
    %108 = vector.broadcast %cst_35 : f32 to vector<8x8xf32>
    %109 = arith.mulf %107, %108 : vector<8x8xf32>
    %cst_36 = arith.constant dense<0xFF800000> : vector<8xf32>
    %110 = vector.multi_reduction <maximumf>, %109, %cst_36 [1] : vector<8x8xf32> to vector<8xf32>
    %111 = vector.shape_cast %110 : vector<8xf32> to vector<8x1xf32>
    %112 = vector.broadcast %111 : vector<8x1xf32> to vector<8x8xf32>
    %113 = arith.subf %109, %112 : vector<8x8xf32>
    %114 = math.exp %113 : vector<8x8xf32>
    %cst_37 = arith.constant dense<0.000000e+00> : vector<8xf32>
    %115 = vector.multi_reduction <add>, %114, %cst_37 [1] : vector<8x8xf32> to vector<8xf32>
    %116 = vector.shape_cast %115 : vector<8xf32> to vector<8x1xf32>
    %117 = tpu.reciprocal %116 {approx = true} : vector<8x1xf32> -> vector<8x1xf32>
    %118 = vector.broadcast %117 : vector<8x1xf32> to vector<8x8xf32>
    %119 = arith.mulf %114, %118 : vector<8x8xf32>
    %120 = arith.truncf %119 : vector<8x8xf32> to vector<8x8xbf16>
    %cst_38 = arith.constant dense<0.000000e+00> : vector<8x8xf32>
    %121 = tpu.matmul %120, %106, %cst_38 {dimension_numbers = #tpu.dot_dimension_numbers<[1], [0], [0], [1], [0, 0, 1, 1], [], []>} : vector<8x8xbf16>, vector<8x8xbf16>, vector<8x8xf32> -> vector<8x8xf32>
    %122 = arith.truncf %121 : vector<8x8xf32> to vector<8x8xbf16>
    %c0_39 = arith.constant 0 : index
    %c24 = arith.constant 24 : index
    %123 = vector.load %arg14[%c0_39, %c24] : memref<8x32xbf16, #tpu.memory_space<vmem>>, vector<8x8xbf16>
    tpu.vector_store %arg14[%c0_39, %c24], %122 {strides = array<i32>} : memref<8x32xbf16, #tpu.memory_space<vmem>>, vector<8x8xbf16>,
    %c0_40 = arith.constant 0 : index
    %c0_41 = arith.constant 0 : index
    %124 = vector.load %arg14[%c0_40, %c0_41] : memref<8x32xbf16, #tpu.memory_space<vmem>>, vector<8x32xbf16>
    %c0_42 = arith.constant 0 : index
    %c0_43 = arith.constant 0 : index
    %125 = vector.load %arg6[%c0_42, %c0_43] : memref<32x32xbf16, #tpu.memory_space<vmem>>, vector<32x32xbf16>
    %cst_44 = arith.constant dense<0.000000e+00> : vector<8x32xf32>
    %126 = tpu.matmul %124, %125, %cst_44 {dimension_numbers = #tpu.dot_dimension_numbers<[1], [0], [0], [1], [0, 0, 1, 1], [], []>} : vector<8x32xbf16>, vector<32x32xbf16>, vector<8x32xf32> -> vector<8x32xf32>
    %c0_45 = arith.constant 0 : index
    %c0_46 = arith.constant 0 : index
    %127 = vector.load %arg7[%c0_45, %c0_46] : memref<1x32xf32, #tpu.memory_space<vmem>>, vector<1x32xf32>
    %128 = vector.broadcast %127 : vector<1x32xf32> to vector<8x32xf32>
    %129 = arith.addf %126, %128 : vector<8x32xf32>
    %130 = arith.addf %129, %1 : vector<8x32xf32>
    %c0_47 = arith.constant 0 : index
    %c0_48 = arith.constant 0 : index
    %c0_49 = arith.constant 0 : index
    %131 = vector.load %arg11[%c0_47, %c0_48, %c0_49] : memref<1x8x32xf32, #tpu.memory_space<vmem>>, vector<1x8x32xf32>
    %132 = vector.shape_cast %131 : vector<1x8x32xf32> to vector<8x32xf32>
    %133 = vector.shape_cast %130 : vector<8x32xf32> to vector<1x8x32xf32>
    tpu.vector_store %arg11[%c0_47, %c0_48, %c0_49], %133 {strides = array<i32>} : memref<1x8x32xf32, #tpu.memory_space<vmem>>, vector<1x8x32xf32>,
    %cst_50 = arith.constant dense<0.000000e+00> : vector<8xf32>
    %134 = vector.multi_reduction <add>, %130, %cst_50 [1] : vector<8x32xf32> to vector<8xf32>
    %135 = vector.shape_cast %134 : vector<8xf32> to vector<8x1xf32>
    %cst_51 = arith.constant 3.200000e+01 : f32
    %136 = vector.broadcast %cst_51 : f32 to vector<8x1xf32>
    %137 = arith.divf %135, %136 : vector<8x1xf32>
    %138 = vector.broadcast %137 : vector<8x1xf32> to vector<8x32xf32>
    %139 = arith.subf %130, %138 : vector<8x32xf32>
    %140 = arith.mulf %139, %139 : vector<8x32xf32>
    %cst_52 = arith.constant dense<0.000000e+00> : vector<8xf32>
    %141 = vector.multi_reduction <add>, %140, %cst_52 [1] : vector<8x32xf32> to vector<8xf32>
    %142 = vector.shape_cast %141 : vector<8xf32> to vector<8x1xf32>
    %cst_53 = arith.constant 3.200000e+01 : f32
    %143 = vector.broadcast %cst_53 : f32 to vector<8x1xf32>
    %144 = arith.divf %142, %143 : vector<8x1xf32>
    %145 = vector.broadcast %137 : vector<8x1xf32> to vector<8x32xf32>
    %146 = arith.subf %130, %145 : vector<8x32xf32>
    %cst_54 = arith.constant 9.99999974E-6 : f32
    %147 = vector.broadcast %cst_54 : f32 to vector<8x1xf32>
    %148 = arith.addf %144, %147 : vector<8x1xf32>
    %149 = math.rsqrt %148 : vector<8x1xf32>
    %150 = vector.broadcast %149 : vector<8x1xf32> to vector<8x32xf32>
    %151 = arith.mulf %146, %150 : vector<8x32xf32>
    %c0_55 = arith.constant 0 : index
    %c0_56 = arith.constant 0 : index
    %152 = vector.load %arg8[%c0_55, %c0_56] : memref<1x32xf32, #tpu.memory_space<vmem>>, vector<1x32xf32>
    %153 = vector.broadcast %152 : vector<1x32xf32> to vector<8x32xf32>
    %154 = arith.mulf %151, %153 : vector<8x32xf32>
    %c0_57 = arith.constant 0 : index
    %c0_58 = arith.constant 0 : index
    %155 = vector.load %arg9[%c0_57, %c0_58] : memref<1x32xf32, #tpu.memory_space<vmem>>, vector<1x32xf32>
    %156 = vector.broadcast %155 : vector<1x32xf32> to vector<8x32xf32>
    %157 = arith.addf %154, %156 : vector<8x32xf32>
    %158 = arith.truncf %157 : vector<8x32xf32> to vector<8x32xbf16>
    %c0_59 = arith.constant 0 : index
    %c0_60 = arith.constant 0 : index
    %c0_61 = arith.constant 0 : index
    %159 = vector.load %arg12[%c0_59, %c0_60, %c0_61] : memref<1x8x32xbf16, #tpu.memory_space<vmem>>, vector<1x8x32xbf16>
    %160 = vector.shape_cast %159 : vector<1x8x32xbf16> to vector<8x32xbf16>
    %161 = vector.shape_cast %158 : vector<8x32xbf16> to vector<1x8x32xbf16>
    tpu.vector_store %arg12[%c0_59, %c0_60, %c0_61], %161 {strides = array<i32>} : memref<1x8x32xbf16, #tpu.memory_space<vmem>>, vector<1x8x32xbf16>,
    %162 = arith.truncf %157 : vector<8x32xf32> to vector<8x32xbf16>
    %c0_62 = arith.constant 0 : index
    %c0_63 = arith.constant 0 : index
    %163 = vector.load %arg10[%c0_62, %c0_63] : memref<32x128xbf16, #tpu.memory_space<vmem>>, vector<32x128xbf16>
    %cst_64 = arith.constant dense<0.000000e+00> : vector<8x128xf32>
    %164 = tpu.matmul %162, %163, %cst_64 {dimension_numbers = #tpu.dot_dimension_numbers<[1], [0], [0], [1], [0, 0, 1, 1], [], []>} : vector<8x32xbf16>, vector<32x128xbf16>, vector<8x128xf32> -> vector<8x128xf32>
    %165 = tpu.iota {dimensions = array<i32: 1>} : vector<8x128xi32>
    %c4_i32 = arith.constant 4 : i32
    %166 = vector.broadcast %c4_i32 : i32 to vector<8x128xi32>
    %167 = arith.cmpi slt, %165, %166 : vector<8x128xi32>
    %cst_65 = arith.constant -1.000000e+30 : f32
    %168 = vector.broadcast %cst_65 : f32 to vector<8x128xf32>
    %169 = arith.select %167, %164, %168 : vector<8x128xi1>, vector<8x128xf32>
    %cst_66 = arith.constant dense<0xFF800000> : vector<8xf32>
    %170 = vector.multi_reduction <maximumf>, %169, %cst_66 [1] : vector<8x128xf32> to vector<8xf32>
    %171 = vector.shape_cast %170 : vector<8xf32> to vector<8x1xf32>
    %172 = vector.broadcast %171 : vector<8x1xf32> to vector<8x128xf32>
    %173 = arith.subf %169, %172 : vector<8x128xf32>
    %174 = math.exp %173 : vector<8x128xf32>
    %cst_67 = arith.constant dense<0.000000e+00> : vector<8xf32>
    %175 = vector.multi_reduction <add>, %174, %cst_67 [1] : vector<8x128xf32> to vector<8xf32>
    %176 = vector.shape_cast %175 : vector<8xf32> to vector<8x1xf32>
    %177 = vector.broadcast %176 : vector<8x1xf32> to vector<8x128xf32>
    %178 = arith.divf %174, %177 : vector<8x128xf32>
    %c0_68 = arith.constant 0 : index
    %c0_69 = arith.constant 0 : index
    %c0_70 = arith.constant 0 : index
    %179 = vector.load %arg13[%c0_68, %c0_69, %c0_70] : memref<1x8x128xf32, #tpu.memory_space<vmem>>, vector<1x8x128xf32>
    %180 = vector.shape_cast %179 : vector<1x8x128xf32> to vector<8x128xf32>
    %181 = vector.shape_cast %178 : vector<8x128xf32> to vector<1x8x128xf32>
    tpu.vector_store %arg13[%c0_68, %c0_69, %c0_70], %181 {strides = array<i32>} : memref<1x8x128xf32, #tpu.memory_space<vmem>>, vector<1x8x128xf32>,
    return
  }
  func.func @transform_0(%arg0: i32) -> (i32, i32, i32) {
    %c0_i32 = arith.constant 0 : i32
    %c0_i32_0 = arith.constant 0 : i32
    %c0_i32_1 = arith.constant 0 : i32
    return %arg0, %c0_i32, %c0_i32_0 : i32, i32, i32
  }
  func.func @transform_1(%arg0: i32) -> (i32, i32) {
    %c0_i32 = arith.constant 0 : i32
    %c0_i32_0 = arith.constant 0 : i32
    %c0_i32_1 = arith.constant 0 : i32
    return %c0_i32, %c0_i32_0 : i32, i32
  }
  func.func @transform_2(%arg0: i32) -> (i32, i32) {
    %c0_i32 = arith.constant 0 : i32
    %c0_i32_0 = arith.constant 0 : i32
    %c0_i32_1 = arith.constant 0 : i32
    return %c0_i32, %c0_i32_0 : i32, i32
  }
  func.func @transform_3(%arg0: i32) -> (i32, i32) {
    %c0_i32 = arith.constant 0 : i32
    %c0_i32_0 = arith.constant 0 : i32
    %c0_i32_1 = arith.constant 0 : i32
    return %c0_i32, %c0_i32_0 : i32, i32
  }
  func.func @transform_4(%arg0: i32) -> (i32, i32) {
    %c0_i32 = arith.constant 0 : i32
    %c0_i32_0 = arith.constant 0 : i32
    %c0_i32_1 = arith.constant 0 : i32
    return %c0_i32, %c0_i32_0 : i32, i32
  }
  func.func @transform_5(%arg0: i32) -> (i32, i32) {
    %c0_i32 = arith.constant 0 : i32
    %c0_i32_0 = arith.constant 0 : i32
    %c0_i32_1 = arith.constant 0 : i32
    return %c0_i32, %c0_i32_0 : i32, i32
  }
  func.func @transform_6(%arg0: i32) -> (i32, i32) {
    %c0_i32 = arith.constant 0 : i32
    %c0_i32_0 = arith.constant 0 : i32
    %c0_i32_1 = arith.constant 0 : i32
    return %c0_i32, %c0_i32_0 : i32, i32
  }
  func.func @transform_7(%arg0: i32) -> (i32, i32) {
    %c0_i32 = arith.constant 0 : i32
    %c0_i32_0 = arith.constant 0 : i32
    %c0_i32_1 = arith.constant 0 : i32
    return %c0_i32, %c0_i32_0 : i32, i32
  }
  func.func @transform_8(%arg0: i32) -> (i32, i32) {
    %c0_i32 = arith.constant 0 : i32
    %c0_i32_0 = arith.constant 0 : i32
    %c0_i32_1 = arith.constant 0 : i32
    return %c0_i32, %c0_i32_0 : i32, i32
  }
  func.func @transform_9(%arg0: i32) -> (i32, i32) {
    %c0_i32 = arith.constant 0 : i32
    %c0_i32_0 = arith.constant 0 : i32
    %c0_i32_1 = arith.constant 0 : i32
    return %c0_i32, %c0_i32_0 : i32, i32
  }
  func.func @transform_10(%arg0: i32) -> (i32, i32, i32) {
    %c0_i32 = arith.constant 0 : i32
    %c0_i32_0 = arith.constant 0 : i32
    %c0_i32_1 = arith.constant 0 : i32
    return %arg0, %c0_i32, %c0_i32_0 : i32, i32, i32
  }
  func.func @transform_11(%arg0: i32) -> (i32, i32, i32) {
    %c0_i32 = arith.constant 0 : i32
    %c0_i32_0 = arith.constant 0 : i32
    %c0_i32_1 = arith.constant 0 : i32
    return %arg0, %c0_i32, %c0_i32_0 : i32, i32, i32
  }
  func.func @transform_12(%arg0: i32) -> (i32, i32, i32) {
    %c0_i32 = arith.constant 0 : i32
    %c0_i32_0 = arith.constant 0 : i32
    %c0_i32_1 = arith.constant 0 : i32
    return %arg0, %c0_i32, %c0_i32_0 : i32, i32, i32
  }
}

</mosaic_0001>

<bundles_post_ra>
// kernel: tpu_custom_call.1
= control target key start
LH: loop header
LB: loop body
LE: loop exit
PB: predicated region body
PF: predicated region fallthrough
CT: control target
= control target key end

     0   :  { %s2068_s0 = inlined_call_operand.hbm [shape: f32[2,8,32], index: 0, kind: input, shape index: {}]   ;;  %s2069_s1 = inlined_call_operand.hbm [shape: f32[1,32], index: 1, kind: input, shape index: {}]   ;;  %s2070_s2 = inlined_call_operand.vmem [shape: f32[1,32], index: 2, kind: input, shape index: {}]   ;;  %s2071_s3 = inlined_call_operand.hbm [shape: bf16[32,96], index: 3, kind: input, shape index: {}]   ;;  %s2072_s4 = inlined_call_operand.vmem [shape: f32[1,96], index: 4, kind: input, shape index: {}]   ;;  %s2073_s5 = inlined_call_operand.hbm [shape: bf16[32,32], index: 5, kind: input, shape index: {}]   ;;  %s2074_s6 = inlined_call_operand.vmem [shape: f32[1,32], index: 6, kind: input, shape index: {}]   ;;  %s2075_s7 = inlined_call_operand.vmem [shape: f32[1,32], index: 7, kind: input, shape index: {}]   ;;  %s2076_s8 = inlined_call_operand.vmem [shape: f32[1,32], index: 8, kind: input, shape index: {}]   ;;  %s2077_s9 = inlined_call_operand.hbm [shape: bf16[32,128], index: 9, kind: input, shape index: {}]   ;;  %s2078_s10 = inlined_call_operand.hbm [shape: f32[2,8,32], index: 10, kind: output, shape index: {0}]   ;;  %s2079_s11 = inlined_call_operand.hbm [shape: bf16[2,8,32], index: 11, kind: output, shape index: {1}]   ;;  %s2080_s12 = inlined_call_operand.hbm [shape: f32[2,8,128], index: 12, kind: output, shape index: {2}]  }
   0x1   :  { %2086 = sst [smem:[#allocation24_spill]] %s2068_s0 }
   0x2   :  { %2087 = sst [smem:[#allocation25_spill]] %s2069_s1 }
   0x3   :  { %2088 = sst [smem:[#allocation26_spill]] %s2071_s3 }
   0x4   :  { %2089 = sst [smem:[#allocation27_spill]] %s2073_s5 }
   0x5   :  { %2090 = sst [smem:[#allocation28_spill]] %s2077_s9 }
   0x6   :  { %18 = vsyncpa [#allocation4], 0 }
   0x7   :  { %20 = vsyncpa [#allocation4 + $0x1], 0 }
   0x8   :  { %21 = vsyncpa [#allocation7], 0 }
   0x9   :  { %22 = vsyncpa [#allocation10], 0 }
   0xa   :  { %23 = vsyncpa [#allocation5], 0 }
   0xb   :  { %25 = vsyncpa [#allocation5 + $0x1], 0 }
   0xc   :  { %26 = vsyncpa [#allocation14], 0 }
   0xd   :  { %28 = vsyncpa [#allocation14 + $0x1], 0  ;;  %s1789_s21 = smov 0   ;;  %s1791_s22 = smov 0  }
   0xe   :  { %s1793_s23 = smov 0   ;;  %s1795_s24 = smov 0  }
   0xf LB: > { %2091 = sst [smem:[#allocation21_spill]] %s1697_s23  ;;  %s1813_s28 = sadd.s32 4294967295, %s1701_s24   ;;  %s1701_s24 = sphi %s1795_s24, %s2109_s24   ;;  %s1697_s23 = sphi %s1793_s23, %s2111_s23   ;;  %s1693_s22 = sphi %s1791_s22, %s2113_s22   ;;  %s1689_s21 = sphi %s1789_s21, %s2112_s21  }
  0x10   : > { %s2092_s1 = sld [smem:[#allocation25_spill]]  ;;  %p1205_p0 = scmp.ge.s32.totalorder %s1701_s24, 1 }
  0x11   : > { %p55_p1 = scmp.eq.s32.totalorder %s1813_s28, 0  ;;  %p332_p2 = scmp.lt.s32.totalorder %s1701_s24, 3 }
  0x12   : > { %s1703_s30 = smov [#allocation6]   ;;  %s2094_s5 = sld [smem:[#allocation27_spill]] }
  0x13   : > { %p1818_p3 = pnand %p1205_p0, %p332_p2  ;;  %s346_s13 = sshll.u32 %s1703_s30, 4  ;;  %s347_s13 = int_to_ptr.vmem [resolvable:$true] %s346_s13 }
  0x14   : > { %s2096_s3 = sld [smem:[#allocation26_spill]]  ;;  %s1704_s25 = smov [#allocation9]  }
  0x15   : > { %p1295_p5 = pneg %p1818_p3  ;;  %s377_s26 = sshll.u32 %s1704_s25, 4  ;;  %s378_s26 = int_to_ptr.vmem [resolvable:$true] %s377_s26 }
  0x16   : > { %s344_s27 = sshll.u32 %s2092_s1, 4  ;;  %s1705_s30 = smov 64   ;;  %s345_s27 = int_to_ptr.hbm [resolvable:$true] %s344_s27 }
  0x17   : > { %p1830_p6 = pnand %p1295_p5, %p55_p1  ;;  %s1706_s14 = smov 4  }
  0x18   : > { %s375_s16 = sshll.u32 %s2094_s5, 4  ;;  %s2097_s9 = sld [smem:[#allocation28_spill]]  ;;  %s376_s16 = int_to_ptr.hbm [resolvable:$true] %s375_s16 }
  0x19   : > { %1298 = dma.hbm_to_vmem [thread:$0]  (!%p1830_p6), %s345_s27, 16, %s347_s13, [#allocation7]  }
  0x1a   : > { %s358_s20 = sshll.u32 %s2096_s3, 4  ;;  %s1707_s19 = smov [#allocation8]   ;;  %s359_s20 = int_to_ptr.hbm [resolvable:$true] %s358_s20 }
  0x1b   : > { %1304 = dma.hbm_to_vmem [thread:$0]  (!%p1830_p6), %s376_s16, 256, %s378_s26, [#allocation10], %s1705_s30, %s1705_s30, %s1706_s14  }
  0x1c   : > { %s360_s27 = sshll.u32 %s1707_s19, 4  ;;  %s1708_s13 = smov [#allocation11]   ;;  %s361_s27 = int_to_ptr.vmem [resolvable:$true] %s360_s27 }
  0x1d   : > { %1301 = dma.hbm_to_vmem [thread:$0]  (!%p1830_p6), %s359_s20, 256, %s361_s27, [#allocation7], %s1705_s30, %s1705_s30, %s1706_s14  }
  0x1e   : > { %s398_s18 = sshll.u32 %s2097_s9, 4  ;;  %s400_s16 = sshll.u32 %s1708_s13, 4  ;;  %s399_s18 = int_to_ptr.hbm [resolvable:$true] %s398_s18  ;;  %s401_s16 = int_to_ptr.vmem [resolvable:$true] %s400_s16 }
  0x1f   : > { %1307 = dma.hbm_to_vmem [thread:$0]  (!%p1830_p6), %s399_s18, 256, %s401_s16, [#allocation10], %s1705_s30, %s1705_s30, %s1706_s14  }
  0x20   : > { %s2081_s1 = sadd.s32 4294967294, %s1701_s24   ;;  %s1850_s25 = sadd.s32 1, %s1701_s24  }
  0x21   : > { %2098 = sst [smem:[#allocation22_spill]] %s1850_s25  ;;  %s38_s26 = ssub.s32 %s1701_s24, %s1850_s25 }
  0x22   : > { %s41_s15 = sadd.s32 1, %s1697_s23  ;;  %p39_p7 = scmp.eq.s32.totalorder %s38_s26, 0 }
  0x23   : > { %p48_p8 = scmp.ne.s32.totalorder %s1697_s23, %s1693_s22  ;;  %p49_p9 = scmp.eq.s32.totalorder %s1701_s24, 0 }
  0x24   : > { %p54_p10 = scmp.ne.s32.totalorder %s1693_s22, %s1689_s21  ;;  %p267_p13 = scmp.eq.s32.totalorder %s1813_s28, 1 }
  0x25   : > { %s1861_s20 = scalar_select %p39_p7, %s1697_s23, %s41_s15  }
  0x26   : > { %p1863_p11 = por %p49_p9, %p48_p8  ;;  %p1869_p12 = por %p55_p1, %p54_p10 }
  0x27   : > { %2099 = sst [smem:[#allocation23_spill]] %s1861_s20  ;;  %p273_p0 = scmp.eq.s32.totalorder %s2081_s1, 1 }
  0x28   : > { %p1326_p2 = scmp.lt.s32.totalorder %s1701_s24, 2  ;;  %s414_s30 = sand.u32 1, %s1697_s23  }
  0x29   : > { %p1878_p5 = por %p267_p13, %p48_p8  ;;  %p1882_p6 = por %p273_p0, %p54_p10 }
  0x2a   : > { %s1211_s27 = sshll.u32 %s414_s30, 3  ;;  %s1212_s13 = sshll.u32 %s1701_s24, 3 }
  0x2b   : > { %s2104_s0 = sld [smem:[#allocation24_spill]]  ;;  %s418_s3 = scalar_lea.vmem [#allocation3], %s1211_s27 }
  0x2c   : > { %s426_s5 = sshll.u32 %s418_s3, 4  ;;  %p1892_p7 = pnand %p1326_p2, %p1863_p11  ;;  %s427_s5 = int_to_ptr.vmem [resolvable:$true] %s426_s5 }
  0x2d   : > { %s415_s20 = scalar_lea.sflag [#allocation4], %s414_s30 }
  0x2e   : > { %p1541_p9 = pneg %p1892_p7 }
  0x31   : > { %s422_s15 = scalar_lea.hbm %s2104_s0, %s1212_s13  ;;  %s1544_s13 = scalar_lea.hbm %s2104_s0, 16 }
  0x32   : > { %s424_s9 = sshll.u32 %s422_s15, 4  ;;  %s425_s9 = int_to_ptr.hbm [resolvable:$true] %s424_s9 }
  0x33   : > { %s1537_s23 = sshra.s32 %s425_s9, 4  ;;  %s1538_s23 = int_to_ptr.hbm [resolvable:$true] %s1537_s23 }
  0x34   : > { %s1539_s25 = scalar_lea.hbm %s1538_s23, 8  ;;  %p1545_p11 = scmp.lt.s32.totalorder %s1538_s23, %s2104_s0 }
  0x35   : > { %p1540_p8 = scmp.ne.s32.totalorder %s1538_s23, %s1539_s25  ;;  %p1546_p0 = scmp.lt.s32.totalorder %s1544_s13, %s1539_s25 }
  0x37   : > { %p1542_p10 = pnand %p1541_p9, %p1540_p8  ;;  %p1547_p2 = por %p1546_p0, %p1545_p11 }
  0x39   : > { %p1543_p13 = pneg %p1542_p10 }
  0x3b   : > { %p1548_p4 = pnand %p1547_p2, %p1543_p13 }
  0x3d   : > { %1551 = shalt.err (!%p1548_p4)
}
  0x3e   : > { %1311 = dma.hbm_to_vmem [thread:$0]  (!%p1892_p7), %s425_s9, 128, %s427_s5, %s415_s20  }
  0x3f   : > { %435 = sbr.rel (%p1818_p3) target bundleno = 2063 (0x80f), region = 60  ;;  %s1909_s30 = sand.u32 (!%p1818_p3), 1, %s1693_s22  }
  0x40   : > { %s1912_s26 = sshll.u32 (!%p1818_p3), %s1909_s30, 3  ;;  %s438_s23 = scalar_lea.sflag (!%p1818_p3), [#allocation4], %s1909_s30 }
  0x41   : > { %s441_s25 = scalar_lea.vmem (!%p1818_p3), [#allocation3], %s1912_s26 }
  0x44   : > { %1668 = dma.done.wait (%p1869_p12), %s438_s23, 128  }
  0x45   : > { %1670 = vsyncadd (%p1869_p12), %s438_s23, 4294967168 }
  0x46   : > { %1672 = dma.done.wait (%p55_p1), [#allocation7], 272  }
  0x47   : > { %1674 = vsyncadd (%p55_p1), [#allocation7], 4294967024 }
  0x48   : > { %1676 = dma.done.wait (%p55_p1), [#allocation10], 512  }
  0x49   : > { %1678 = vsyncadd (%p55_p1), [#allocation10], 4294966784  ;;  %vm515_vm0 = vcmask 261120   ;;  %v1928_v0 = vld [vmem:[%s441_s25] sm:$0xff]  ;;  %v1709_v2 = vmov 32.0   ;;  %v1265_v15 = vld [vmem:[#allocation8] sm:$0xff] }
  0x4a   : > { %v516_v1 = vsel %vm515_vm0, %v1928_v0, 0.0  ;;  %1391 = vrcp.f32 %v1709_v2  ;;  %v1266_v14 = vld [vmem:[#allocation8 + $0x8] sm:$0xff]  ;;  %v1385_v25 = vld [vmem:[#allocation6] ss:$0 sm:$0xff]  ;;  %s1710_s20 = smov 104   ;;  %s1711_s17 = smov 120  }
  0x4b   : > { %517 = vadd.xlane.f32.xlu0 %v516_v1  ;;  %585 = vmatpush.bf16.msra.mxu0 %v1266_v14  ;;  %v1386_v28 = vld [vmem:[%s2070_s2] ss:$0 sm:$0xff]  ;;  %s1712_s15 = smov 96   ;;  %s1713_s27 = smov 72   ;;  %vm596_vm5 = vcmask 64512   ;;  %vm634_vm6 = vcmask 1043456  }
  0x4c   : > { %v1387_v32 = vld [vmem:[%s2072_s4] ss:$0 sm:$0xff]  ;;  %s1714_s3 = smov 88   ;;  %s1715_s13 = smov 112   ;;  %vm652_vm7 = vcmask 60416   ;;  %vm716_vm8 = vcmask 126016  }
  0x4d   : > { %s1716_s16 = smov 80   ;;  %s1717_s19 = smov 64   ;;  %vm780_vm9 = vcmask 191616   ;;  %vm844_vm10 = vcmask 257216   ;;  %vm918_vm14 = vcmask 257024  }
  0x4e   : > { %s1718_s23 = smov 56   ;;  %s1719_s25 = smov 40  }
  0x4f   : > { %586 = vmatpush.bf16.msra.mxu0 %v1265_v15  ;;  %s1720_s5 = smov 48   ;;  %s1721_s9 = smov 8  }
  0x50   : > { %v1392_v3 = vpop.eup %1391  ;;  %s1722_s29 = smov 24   ;;  %s1723_s1 = smov 16  }
  0x51   : > { %v520_v4 = vmul.f32 32.0, %v1392_v3  ;;  %vm524_vm1 = vweird.f32 %v1392_v3 }
  0x53   : > { %v521_v5 = vsub.f32 1.0, %v520_v4 }
  0x55   : > { %v522_v6 = vmul.f32 %v1392_v3, %v521_v5 }
  0x57   : > { %v523_v7 = vadd.f32 %v1392_v3, %v522_v6 }
  0x59   : > { %v1932_v8 = vsel %vm524_vm1, %v1392_v3, %v523_v7 }
  0xbe   : > { %v518_v9 = vpop.xlane.xlu0 %517 }
  0xbf   : > { %v526_v10 = vmul.f32 %v1932_v8, %v518_v9 }
  0xc1   : > { %v527_v11 = vsub.f32 %v1928_v0, %v526_v10 }
  0xc3   : > { %v528_v12 = vmul.f32 %v527_v11, %v527_v11 }
  0xc5   : > { %v529_v13 = vsel %vm515_vm0, %v528_v12, 0.0 }
  0xc6   : > { %530 = vadd.xlane.f32.xlu0 %v529_v13 }
 0x139   : > { %v531_v16 = vpop.xlane.xlu0 %530 }
 0x13a   : > { %v532_v17 = vmul.f32 %v531_v16, %v1932_v8 }
 0x13c   : > { %v533_v18 = vadd.f32 1e-05, %v532_v17 }
 0x13e   : > { %1393 = vrsqrt.f32 %v533_v18  ;;  %vm540_vm3 = vweird.f32 %v533_v18 }
 0x144   : > { %v1394_v19 = vpop.eup %1393 }
 0x145   : > { %v535_v20 = vmul.f32 %v1394_v19, %v533_v18  ;;  %vm541_vm2 = vweird.f32 %v1394_v19 }
 0x146   : > { %vm542_vm4 = vmor %vm540_vm3, %vm541_vm2 }
 0x147   : > { %v536_v21 = vmul.f32 %v1394_v19, %v535_v20 }
 0x149   : > { %v537_v22 = vmul.f32 0.5, %v536_v21 }
 0x14b   : > { %v538_v23 = vsub.f32 1.5, %v537_v22 }
 0x14d   : > { %v539_v24 = vmul.f32 %v1394_v19, %v538_v23 }
 0x14f   : > { %v543_v26 = vsel %vm542_vm4, %v1394_v19, %v539_v24 }
 0x150   : > { %v544_v27 = vmul.f32 %v543_v26, %v527_v11 }
 0x152   : > { %v549_v29 = vmul.f32 %v1385_v25, %v544_v27 }
 0x154   : > { %v554_v30 = vadd.f32 %v1386_v28, %v549_v29 }
 0x156   : > { %v555_v31 = vpack.c.bf16 %v554_v30, %v554_v30 }
 0x158   : > { %1230 = vmatmul.msk.bf16.vlgmr.msra.gmra.mxu0 %vm515_vm0, %v555_v31 }
 0x1d5   : > { %v588_v33 = vpop.f32.mrf.mxu0 }
 0x1d6   : > { %v589_v34 = vadd.f32 %v1387_v32, %v588_v33 }
 0x1d8   : > { %v592_v35 = vpack.c.bf16 %v589_v34, %v589_v34 }
 0x1da   : > { %782 = vrot.lane.b32.xlu0 %v592_v35, %s1710_s20  ;;  %654 = vrot.lane.b32.xlu2 %v592_v35, %s1711_s17 }
 0x1db   : > { %594 = vrot.lane.b32.xlu1 %v592_v35, %s1712_s15  ;;  %s2085_s15 = scalar_lea.vmem [#allocation12], %s1912_s26 }
 0x1dd   : > { %v590_v36 = vpop.f32.mrf.mxu0 }
 0x1e2   : > { %784 = vrot.lane.b32.xlu2 %v592_v35, %s1713_s27 }
 0x1e3   : > { %656 = vrot.lane.b32.xlu1 %v592_v35, %s1714_s3 }
 0x1ea   : > { %718 = vrot.lane.b32.xlu2 %v592_v35, %s1715_s13 }
 0x1eb   : > { %720 = vrot.lane.b32.xlu1 %v592_v35, %s1716_s16 }
 0x234   : > { %v655_v37 = vpop.permute.xlu2 %654 }
 0x23c   : > { %v785_v40 = vpop.permute.xlu2 %784 }
 0x23d   : > { %v790_v43 = vsel %vm596_vm5, %v785_v40, 0 }
 0x244   : > { %v719_v46 = vpop.permute.xlu2 %718 }
 0x24c   : > { %v783_v47 = vpop.permute.xlu0 %782 }
 0x24d   : > { %v595_v38 = vpop.permute.xlu1 %594 }
 0x24e   : > { %v601_v39 = vsel %vm596_vm5, %v595_v38, 0 }
 0x24f   : > { %610 = vmatpush.bf16.xpose.msra.mxu1 %v601_v39 }
 0x255   : > { %v657_v41 = vpop.permute.xlu1 %656 }
 0x256   : > { %1231 = vmatmul.msk.bf16.vlgmr.msra.gmra.mxu1 %vm596_vm5, %v592_v35  ;;  %v662_v42 = vsel %vm596_vm5, %v657_v41, 0 }
 0x257   : > { %671 = vmatpush.bf16.xpose.msra.mxu3 %v662_v42 }
 0x25d   : > { %v721_v44 = vpop.permute.xlu1 %720 }
 0x25e   : > { %1233 = vmatmul.msk.bf16.vlgmr.msra.gmra.mxu3 %vm596_vm5, %v655_v37  ;;  %v726_v45 = vsel %vm596_vm5, %v721_v44, 0 }
 0x25f   : > { %799 = vmatpush.bf16.xpose.msrb.mxu3 %v790_v43  ;;  %735 = vmatpush.bf16.xpose.msrb.mxu0 %v726_v45 }
 0x266   : > { %1235 = vmatmul.msk.bf16.vlgmr.msrb.gmra.mxu0 %vm596_vm5, %v719_v46 }
 0x26e   : > { %1237 = vmatmul.msk.bf16.vlgmr.msrb.gmra.mxu3 %vm596_vm5, %v783_v47 }
 0x2d3   : > { %v612_v48 = vpop.f32.mrf.mxu1 }
 0x2d4   : > { %v616_v49 = vmul.f32 0.35355338, %v612_v48 }
 0x2d6   : > { %v617_v50 = vsel %vm596_vm5, %v616_v49, -inf }
 0x2d7   : > { %618 = vmax.xlane.f32.xlu1 %v617_v50 }
 0x2db   : > { %v614_v51 = vpop.f32.mrf.mxu1 }
 0x2e1   : > { %v673_v52 = vpop.f32.mrf.mxu3 }
 0x2e2   : > { %v677_v53 = vmul.f32 0.35355338, %v673_v52 }
 0x2e3   : > { %v737_v54 = vpop.f32.mrf.mxu0 }
 0x2e4   : > { %v678_v55 = vsel %vm596_vm5, %v677_v53, -inf  ;;  %v741_v56 = vmul.f32 0.35355338, %v737_v54 }
 0x2e5   : > { %679 = vmax.xlane.f32.xlu2 %v678_v55 }
 0x2e6   : > { %v742_v59 = vsel %vm596_vm5, %v741_v56, -inf }
 0x2e9   : > { %v675_v57 = vpop.f32.mrf.mxu3 }
 0x2eb   : > { %v739_v58 = vpop.f32.mrf.mxu0 }
 0x2ec   : > { %v1268_v58 = vld [vmem:[#allocation9 + $0x8] sm:$0xff] }
 0x2ed   : > { %743 = vmax.xlane.f32.xlu2 %v742_v59  ;;  %876 = vmatpush.bf16.msra.mxu0 %v1268_v58  ;;  %v1267_v59 = vld [vmem:[#allocation9] sm:$0xff] }
 0x2f1   : > { %v801_v60 = vpop.f32.mrf.mxu3  ;;  %877 = vmatpush.bf16.msra.mxu0 %v1267_v59 }
 0x2f2   : > { %v805_v61 = vmul.f32 0.35355338, %v801_v60 }
 0x2f4   : > { %v806_v62 = vsel %vm596_vm5, %v805_v61, -inf }
 0x2f5   : > { %807 = vmax.xlane.f32.xlu0 %v806_v62 }
 0x2f9   : > { %v803_v63 = vpop.f32.mrf.mxu3 }
 0x305   : > { %629 = vrot.lane.b32.xlu2 %v592_v35, %s1717_s19  ;;  %s1220_s19 = sshll.u32 %s1909_s30, 2 }
 0x309   : > { %690 = vrot.lane.b32.xlu0 %v592_v35, %s1718_s23  ;;  %s505_s23 = scalar_lea.vmem [#allocation13], %s1220_s19 }
 0x30a   : > { %s1016_s20 = sshll.u32 %s505_s23, 4  ;;  %s1017_s20 = int_to_ptr.vmem [resolvable:$true] %s1016_s20 }
 0x30d   : > { %818 = vrot.lane.b32.xlu2 %v592_v35, %s1719_s25  ;;  %s1261_s25 = sshll.u32 %s1813_s28, 2 }
 0x311   : > { %754 = vrot.lane.b32.xlu0 %v592_v35, %s1720_s5  ;;  %s984_s5 = sand.u32 1, %s1813_s28  }
 0x312   : > { %s1998_s27 = scalar_lea.sflag [#allocation14], %s984_s5 }
 0x34a   : > { %v619_v1 = vpop.xlane.xlu1 %618 }
 0x34b   : > { %v620_v2 = vsub.f32 %v616_v49, %v619_v1  ;;  %v1388_v1 = vld [vmem:[%s2074_s6] ss:$0 sm:$0xff] }
 0x34d   : > { %v621_v3 = vmul.f32 1.442695, %v620_v2 }
 0x34f   : > { %1395 = vpow2.f32 %v621_v3 }
 0x355   : > { %v1396_v4 = vpop.eup %1395 }
 0x356   : > { %v623_v5 = vsel %vm596_vm5, %v1396_v4, 0.0 }
 0x357   : > { %624 = vadd.xlane.f32.xlu1 %v623_v5 }
 0x358   : > { %v680_v6 = vpop.xlane.xlu2 %679 }
 0x359   : > { %v681_v7 = vsub.f32 %v677_v53, %v680_v6 }
 0x35b   : > { %v682_v9 = vmul.f32 1.442695, %v681_v7 }
 0x35d   : > { %1397 = vpow2.f32 %v682_v9 }
 0x360   : > { %v744_v10 = vpop.xlane.xlu2 %743 }
 0x361   : > { %v745_v17 = vsub.f32 %v741_v56, %v744_v10 }
 0x363   : > { %v1398_v11 = vpop.eup %1397  ;;  %v746_v19 = vmul.f32 1.442695, %v745_v17 }
 0x364   : > { %v684_v12 = vsel %vm596_vm5, %v1398_v11, 0.0 }
 0x365   : > { %685 = vadd.xlane.f32.xlu1 %v684_v12 }
 0x368   : > { %v808_v13 = vpop.xlane.xlu0 %807  ;;  %v630_v14 = vpop.permute.xlu2 %629 }
 0x369   : > { %v809_v15 = vsub.f32 %v805_v61, %v808_v13  ;;  %v636_v16 = vsel %vm634_vm6, %v630_v14, 0  ;;  %v1270_v13 = vld [vmem:[#allocation11 + $0x8] sm:$0xff]  ;;  %v1269_v14 = vld [vmem:[#allocation11] sm:$0xff] }
 0x36a   : > { %645 = vmatpush.bf16.msra.mxu2 %v636_v16 }
 0x36b   : > { %v810_v18 = vmul.f32 1.442695, %v809_v15 }
 0x36d   : > { %1399 = vpow2.f32 %v810_v18 }
 0x36e   : > { %1401 = vpow2.f32 %v746_v19 }
 0x370   : > { %v819_v31 = vpop.permute.xlu2 %818 }
 0x371   : > { %v824_v33 = vsel %vm634_vm6, %v819_v31, 0 }
 0x373   : > { %v1400_v20 = vpop.eup %1399 }
 0x374   : > { %v812_v21 = vsel %vm596_vm5, %v1400_v20, 0.0  ;;  %v1402_v22 = vpop.eup %1401 }
 0x375   : > { %813 = vadd.xlane.f32.xlu1 %v812_v21  ;;  %v748_v25 = vsel %vm596_vm5, %v1402_v22, 0.0 }
 0x37b   : > { %v691_v23 = vpop.permute.xlu0 %690 }
 0x37c   : > { %v696_v24 = vsel %vm634_vm6, %v691_v23, 0  ;;  %v1389_v23 = vld [vmem:[%s2075_s7] ss:$0 sm:$0xff] }
 0x37d   : > { %705 = vmatpush.bf16.msrb.mxu2 %v696_v24  ;;  %749 = vadd.xlane.f32.xlu1 %v748_v25 }
 0x383   : > { %v755_v26 = vpop.permute.xlu0 %754 }
 0x384   : > { %v760_v27 = vsel %vm634_vm6, %v755_v26, 0 }
 0x385   : > { %769 = vmatpush.bf16.msrb.mxu1 %v760_v27 }
 0x389   : > { %945 = vmatpush.bf16.msra.mxu1 %v1270_v13 }
 0x38d   : > { %946 = vmatpush.bf16.msra.mxu1 %v1269_v14 }
 0x3ca   : > { %v625_v28 = vpop.xlane.xlu1 %624 }
 0x3cb   : > { %1403 = vrcp.f32 %v625_v28 }
 0x3d1   : > { %v1404_v29 = vpop.eup %1403 }
 0x3d2   : > { %v627_v30 = vmul.f32 %v1404_v29, %v1396_v4  ;;  %v952_v29 = vlaneseq }
 0x3d4   : > { %v628_v32 = vpack.c.bf16 %v627_v30, %v627_v30  ;;  %v953_v30 = vand.u32 127, %v952_v29 }
 0x3d6   : > { %1232 = vmatmul.msk.bf16.vlgmr.msra.gmra.mxu2 %vm596_vm5, %v628_v32  ;;  %vm954_vm15 = vcmp.lt.s32.totalorder %v953_v30, 4 }
 0x3d7   : > { %833 = vmatpush.bf16.msra.mxu2 %v824_v33 }
 0x3d8   : > { %v686_v34 = vpop.xlane.xlu1 %685 }
 0x3d9   : > { %1405 = vrcp.f32 %v686_v34 }
 0x3df   : > { %v1406_v35 = vpop.eup %1405 }
 0x3e0   : > { %v688_v36 = vmul.f32 %v1406_v35, %v1398_v11 }
 0x3e2   : > { %v689_v37 = vpack.c.bf16 %v688_v36, %v688_v36 }
 0x3e6   : > { %1234 = vmatmul.msk.bf16.vlgmr.msrb.gmra.mxu2 %vm596_vm5, %v689_v37 }
 0x3e8   : > { %v814_v38 = vpop.xlane.xlu1 %813 }
 0x3e9   : > { %1407 = vrcp.f32 %v814_v38 }
 0x3ef   : > { %v1408_v39 = vpop.eup %1407 }
 0x3f0   : > { %v816_v40 = vmul.f32 %v1408_v39, %v1400_v20  ;;  %v750_v41 = vpop.xlane.xlu1 %749 }
 0x3f1   : > { %1409 = vrcp.f32 %v750_v41 }
 0x3f2   : > { %v817_v42 = vpack.c.bf16 %v816_v40, %v816_v40 }
 0x3f6   : > { %1238 = vmatmul.msk.bf16.vlgmr.msra.gmra.mxu2 %vm596_vm5, %v817_v42 }
 0x3f7   : > { %v1410_v43 = vpop.eup %1409 }
 0x3f8   : > { %v752_v44 = vmul.f32 %v1410_v43, %v1402_v22 }
 0x3fa   : > { %v753_v45 = vpack.c.bf16 %v752_v44, %v752_v44 }
 0x3fc   : > { %1236 = vmatmul.msk.bf16.vlgmr.msrb.gmra.mxu1 %vm596_vm5, %v753_v45 }
 0x459   : > { %v647_v46 = vpop.f32.mrf.mxu2 }
 0x45a   : > { %v651_v47 = vpack.c.bf16 %v647_v46, %v647_v46 }
 0x45c   : > { %653 = vst.msk [vmem:[#allocation2] sm:$0xf] %vm652_vm7, %v651_v47 }
 0x461   : > { %v649_v48 = vpop.f32.mrf.mxu2 }
 0x469   : > { %v707_v49 = vpop.f32.mrf.mxu2 }
 0x46a   : > { %v711_v50 = vpack.c.bf16 %v707_v49, %v707_v49 }
 0x46c   : > { %713 = vrot.lane.b32.xlu1 %v711_v50, %s1721_s9 }
 0x471   : > { %v709_v51 = vpop.f32.mrf.mxu2 }
 0x479   : > { %v771_v52 = vpop.f32.mrf.mxu1  ;;  %v835_v53 = vpop.f32.mrf.mxu2 }
 0x47a   : > { %v775_v54 = vpack.c.bf16 %v771_v52, %v771_v52  ;;  %v839_v55 = vpack.c.bf16 %v835_v53, %v835_v53 }
 0x47c   : > { %841 = vrot.lane.b32.xlu0 %v839_v55, %s1722_s29  ;;  %777 = vrot.lane.b32.xlu2 %v775_v54, %s1723_s1  ;;  %s1014_s1 = scalar_lea.hbm %s2079_s11, %s1261_s25 }
 0x47d   : > { %s1018_s17 = sshll.u32 %s1014_s1, 4  ;;  %s1019_s17 = int_to_ptr.hbm [resolvable:$true] %s1018_s17 }
 0x47e   : > { %s1581_s3 = sshra.s32 %s1019_s17, 4  ;;  %s1582_s3 = int_to_ptr.hbm [resolvable:$true] %s1581_s3 }
 0x47f   : > { %s1583_s13 = scalar_lea.hbm %s1582_s3, 4  ;;  %p1588_p12 = scmp.lt.s32.totalorder %s1582_s3, %s2079_s11 }
 0x480   : > { %p1584_p1 = scmp.ne.s32.totalorder %s1582_s3, %s1583_s13 }
 0x481   : > { %v773_v56 = vpop.f32.mrf.mxu1  ;;  %v837_v57 = vpop.f32.mrf.mxu2 }
 0x482   : > { %p1585_p3 = pnand %p1584_p1, %p1878_p5 }
 0x484   : > { %p1586_p4 = pneg %p1585_p3 }
 0x4d6   : > { %v778_v61 = vpop.permute.xlu2 %777 }
 0x4de   : > { %v714_v60 = vpop.permute.xlu1 %713 }
 0x4df   : > { %717 = vst.msk [vmem:[#allocation2] sm:$0xf] %vm716_vm8, %v714_v60 }
 0x4e0   : > { %781 = vst.msk [vmem:[#allocation2] sm:$0xf] %vm780_vm9, %v778_v61 }
 0x4ee   : > { %v842_v62 = vpop.permute.xlu0 %841 }
 0x4ef   : > { %845 = vst.msk [vmem:[#allocation2] sm:$0xf] %vm844_vm10, %v842_v62 }
 0x4f6   : > { %v846_v63 = vld [vmem:[#allocation2] sm:$0xf] }
 0x4f7   : > { %1247 = vmatmul.msk.bf16.vlgmr.msra.gmra.mxu0 %vm515_vm0, %v846_v63 }
 0x574   : > { %v879_v2 = vpop.f32.mrf.mxu0 }
 0x575   : > { %v880_v3 = vadd.f32 %v1388_v1, %v879_v2 }
 0x577   : > { %v883_v4 = vadd.f32 %v880_v3, %v1928_v0 }
 0x579   : > { %v885_v5 = vsel %vm515_vm0, %v883_v4, 0.0  ;;  %884 = vst.msk [vmem:[%s2085_s15] sm:$0xff] %vm515_vm0, %v883_v4  ;;  %s1587_s15 = scalar_lea.hbm %s2079_s11, 8 }
 0x57a   : > { %886 = vadd.xlane.f32.xlu2 %v885_v5  ;;  %p1589_p7 = scmp.lt.s32.totalorder %s1587_s15, %s1583_s13 }
 0x57c   : > { %v881_v6 = vpop.f32.mrf.mxu0  ;;  %p1590_p8 = por %p1589_p7, %p1588_p12 }
 0x57e   : > { %p1591_p9 = pnand %p1590_p8, %p1586_p4 }
 0x5ed   : > { %v887_v7 = vpop.xlane.xlu2 %886 }
 0x5ee   : > { %v888_v9 = vmul.f32 %v887_v7, %v1932_v8 }
 0x5f0   : > { %v889_v10 = vsub.f32 %v883_v4, %v888_v9 }
 0x5f2   : > { %v890_v11 = vmul.f32 %v889_v10, %v889_v10 }
 0x5f4   : > { %v891_v12 = vsel %vm515_vm0, %v890_v11, 0.0 }
 0x5f5   : > { %892 = vadd.xlane.f32.xlu0 %v891_v12 }
 0x668   : > { %v893_v0 = vpop.xlane.xlu0 %892 }
 0x669   : > { %v894_v15 = vmul.f32 %v893_v0, %v1932_v8  ;;  %v1390_v8 = vld [vmem:[%s2076_s8] ss:$0 sm:$0xff] }
 0x66b   : > { %v895_v16 = vadd.f32 1e-05, %v894_v15 }
 0x66d   : > { %1411 = vrsqrt.f32 %v895_v16  ;;  %vm902_vm12 = vweird.f32 %v895_v16 }
 0x673   : > { %v1412_v17 = vpop.eup %1411 }
 0x674   : > { %v897_v18 = vmul.f32 %v1412_v17, %v895_v16  ;;  %vm903_vm11 = vweird.f32 %v1412_v17 }
 0x675   : > { %vm904_vm13 = vmor %vm902_vm12, %vm903_vm11 }
 0x676   : > { %v898_v19 = vmul.f32 %v1412_v17, %v897_v18 }
 0x678   : > { %v899_v20 = vmul.f32 0.5, %v898_v19 }
 0x67a   : > { %v900_v21 = vsub.f32 1.5, %v899_v20 }
 0x67c   : > { %v901_v22 = vmul.f32 %v1412_v17, %v900_v21 }
 0x67e   : > { %v905_v24 = vsel %vm904_vm13, %v1412_v17, %v901_v22 }
 0x67f   : > { %v906_v25 = vmul.f32 %v905_v24, %v889_v10 }
 0x681   : > { %v911_v26 = vmul.f32 %v1389_v23, %v906_v25 }
 0x683   : > { %v916_v27 = vadd.f32 %v1390_v8, %v911_v26 }
 0x685   : > { %v917_v28 = vpack.c.bf16 %v916_v27, %v916_v27 }
 0x687   : > { %1256 = vmatmul.msk.bf16.vlgmr.msra.gmra.mxu1 %vm515_vm0, %v917_v28  ;;  %919 = vst.msk [vmem:[%s505_s23] sm:$0xf] %vm918_vm14, %v917_v28 }
 0x704   : > { %v948_v31 = vpop.f32.mrf.mxu1 }
 0x705   : > { %v955_v32 = vsel %vm954_vm15, %v948_v31, -1e+30 }
 0x706   : > { %956 = vmax.xlane.f32.xlu1 %v955_v32 }
 0x70c   : > { %v950_v33 = vpop.f32.mrf.mxu1 }
 0x779   : > { %v957_v34 = vpop.xlane.xlu1 %956 }
 0x77a   : > { %v958_v35 = vsub.f32 %v955_v32, %v957_v34 }
 0x77c   : > { %v959_v36 = vmul.f32 1.442695, %v958_v35 }
 0x77e   : > { %1413 = vpow2.f32 %v959_v36 }
 0x784   : > { %v1990_v37 = vpop.eup %1413 }
 0x785   : > { %961 = vadd.xlane.f32.xlu2 %v1990_v37 }
 0x786   : > { %1594 = shalt.err (!%p1591_p9)
}
 0x787   : > { %1290 = dma.vmem_to_hbm [thread:$0]  (%p1878_p5), %s1017_s20, 64, %s1019_s17, %s1998_s27  }
 0x788   : > { %s1260_s23 = sshll.u32 %s1813_s28, 3  ;;  %s2106_s25 = scalar_lea.vmem [#allocation12], %s1912_s26 }
 0x789   : > { %s1002_s5 = sshll.u32 %s2106_s25, 4  ;;  %s1000_s15 = scalar_lea.hbm %s2078_s10, %s1260_s23  ;;  %s1003_s5 = int_to_ptr.vmem [resolvable:$true] %s1002_s5 }
 0x78a   : > { %s1004_s1 = sshll.u32 %s1000_s15, 4  ;;  %s980_s3 = scalar_lea.sflag [#allocation5], %s1909_s30  ;;  %s1005_s1 = int_to_ptr.hbm [resolvable:$true] %s1004_s1 }
 0x78b   : > { %s1609_s13 = sshra.s32 %s1005_s1, 4  ;;  %s1615_s19 = scalar_lea.hbm %s2078_s10, 16  ;;  %s1610_s13 = int_to_ptr.hbm [resolvable:$true] %s1609_s13 }
 0x78c   : > { %s1611_s16 = scalar_lea.hbm %s1610_s13, 8  ;;  %p1616_p0 = scmp.lt.s32.totalorder %s1610_s13, %s2078_s10 }
 0x78d   : > { %p1612_p10 = scmp.ne.s32.totalorder %s1610_s13, %s1611_s16  ;;  %p1617_p2 = scmp.lt.s32.totalorder %s1615_s19, %s1611_s16 }
 0x78f   : > { %p1613_p13 = pnand %p1612_p10, %p1878_p5  ;;  %p1618_p1 = por %p1617_p2, %p1616_p0 }
 0x791   : > { %p1614_p11 = pneg %p1613_p13 }
 0x793   : > { %p1619_p3 = pnand %p1618_p1, %p1614_p11 }
 0x795   : > { %1622 = shalt.err (!%p1619_p3)
}
 0x796   : > { %1289 = dma.vmem_to_hbm [thread:$0]  (%p1878_p5), %s1003_s5, 128, %s1005_s1, %s980_s3  }
 0x797   : > { %s1028_s0 = scalar_lea.hbm %s2080_s12, %s1260_s23  ;;  %s512_s15 = scalar_lea.vmem [#allocation15], %s1912_s26 }
 0x798   : > { %s1032_s5 = sshll.u32 %s1028_s0, 4  ;;  %s1030_s1 = sshll.u32 %s512_s15, 4  ;;  %s1031_s1 = int_to_ptr.vmem [resolvable:$true] %s1030_s1  ;;  %s1033_s5 = int_to_ptr.hbm [resolvable:$true] %s1032_s5 }
 0x799   : > { %s1637_s28 = sshra.s32 %s1033_s5, 4  ;;  %s1643_s26 = scalar_lea.hbm %s2080_s12, 16  ;;  %s1638_s28 = int_to_ptr.hbm [resolvable:$true] %s1637_s28 }
 0x79a   : > { %s1639_s3 = scalar_lea.hbm %s1638_s28, 8  ;;  %p1644_p8 = scmp.lt.s32.totalorder %s1638_s28, %s2080_s12 }
 0x79b   : > { %p1640_p4 = scmp.ne.s32.totalorder %s1638_s28, %s1639_s3  ;;  %p1645_p9 = scmp.lt.s32.totalorder %s1643_s26, %s1639_s3 }
 0x79d   : > { %p1641_p12 = pnand %p1640_p4, %p1878_p5  ;;  %p1646_p10 = por %p1645_p9, %p1644_p8 }
 0x79f   : > { %p1642_p7 = pneg %p1641_p12 }
 0x7a1   : > { %p1647_p13 = pnand %p1646_p10, %p1642_p7 }
 0x7f8   : > { %v962_v38 = vpop.xlane.xlu2 %961 }
 0x7f9   : > { %1415 = vrcp.f32 %v962_v38  ;;  %v974_v42 = vand.u32 2147483648, %v962_v38  ;;  %v972_v44 = vand.u32 2147483647, %v962_v38  ;;  %vm968_vm1 = vweird.f32 %v962_v38 }
 0x7fb   : > { %v975_v46 = vor.u32 1.1754944e-38, %v974_v42  ;;  %vm973_vm3 = vcmp.eq.f32.partialorder %v972_v44, 8.507059e+37 }
 0x7ff   : > { %v1416_v39 = vpop.eup %1415 }
 0x800   : > { %v964_v40 = vmul.f32 %v1416_v39, %v962_v38  ;;  %vm969_vm0 = vweird.f32 %v1416_v39 }
 0x801   : > { %vm970_vm2 = vmor %vm968_vm1, %vm969_vm0 }
 0x802   : > { %v965_v41 = vsub.f32 1.0, %v964_v40 }
 0x804   : > { %v966_v43 = vmul.f32 %v1416_v39, %v965_v41 }
 0x806   : > { %v967_v45 = vadd.f32 %v1416_v39, %v966_v43 }
 0x808   : > { %v971_v47 = vsel %vm970_vm2, %v1416_v39, %v967_v45 }
 0x809   : > { %v976_v48 = vsel %vm973_vm3, %v975_v46, %v971_v47 }
 0x80a   : > { %v977_v49 = vmul.f32 %v1990_v37, %v976_v48 }
 0x80c   : > { %978 = vst [vmem:[%s512_s15] sm:$0xff] %v977_v49 }
 0x80d   : > { %1650 = shalt.err (!%p1647_p13)
}
 0x80e   : > { %1291 = dma.vmem_to_hbm [thread:$0]  (%p1878_p5), %s1031_s1, 128, %s1033_s5, %s1998_s27  }
 0x80f PF: > { %s1044_s17 = sand.u32 1, %s1689_s21   ;;  %p2107_p11 = scmp.ge.s32.totalorder %s1701_s24, 2 }
 0x810   : > { %s1045_s19 = scalar_lea.sflag [#allocation5], %s1044_s17 }
 0x811   : > { %p1313_p0 = pnand %p2107_p11, %p1882_p6 }
 0x813   : > { %p1314_p2 = pneg %p1313_p0 }
 0x815   : > { %1680 = dma.done.wait (%p1314_p2), %s1045_s19, 128  }
 0x816   : > { %1682 = vsyncadd (%p1314_p2), %s1045_s19, 4294967168  ;;  %s2108_s9 = sadd.s32 4294967294, %s1701_s24  }
 0x817   : > { %s1054_s25 = sand.u32 1, %s2108_s9  }
 0x818   : > { %s1055_s30 = scalar_lea.sflag [#allocation14], %s1054_s25 }
 0x819   : > { %1684 = dma.done.wait (%p1314_p2), %s1055_s30, 192  }
 0x81a   : > { %1686 = vsyncadd (%p1314_p2), %s1055_s30, 4294967104  ;;  %s2109_s24 = sld [smem:[#allocation22_spill]]  ;;  %s2112_s21 = smov %s1693_s22 }
 0x81b   : > { %s2110_s14 = sld [smem:[#allocation21_spill]] }
 0x81c   : > { %s2111_s23 = sld [smem:[#allocation23_spill]] }
 0x820   : > { %p31_p5 = scmp.ge.s32.totalorder %s2109_s24, 4  }
 0x821   : > { %s2113_s22 = smov %s2110_s14 }
 0x822   :  { %33 = sbr.rel (!%p31_p5) target bundleno = 15 (0xf), region = 153 }
 0x827   :  { %1071 = vsyncpa [#allocation4], 1 }
 0x828   :  { %1073 = vsyncpa [#allocation4 + $0x1], 1 }
 0x829   :  { %1074 = vsyncpa [#allocation7], 1 }
 0x82a   :  { %1075 = vsyncpa [#allocation10], 1 }
 0x82b   :  { %1076 = vsyncpa [#allocation5], 1 }
 0x82c   :  { %1078 = vsyncpa [#allocation5 + $0x1], 1 }
 0x82d   :  { %1079 = vsyncpa [#allocation14], 1 }
 0x82e   :  { %1081 = vsyncpa [#allocation14 + $0x1], 1 }

</bundles_post_ra>
